<compile_context>
chip_gen: v6e
topology: v6e:2x2x1
jax: 0.10.0
libtpu: 0.0.40
codegen_flags: <defaults>
</compile_context>

<pallas_src>
import jax
import jax.numpy as jnp
from jax.experimental import pallas as pl
from jax.experimental.pallas import tpu as pltpu


def _downsampler_kernel(x_ref, wg_ref, scale_ref, bias_ref, o_ref):
    # x_ref:     (1, TR, Wp, 6*Cin)  phase-merged padded input rows for this tile
    # wg_ref:    (2, 6*Cin, Cconv)   grouped conv taps (group 0: kw in {0,1}, group 1: kw==2)
    # scale_ref: (1, Cout)           folded BN scale (conv channels first, pool channels last)
    # bias_ref:  (1, Cout)           folded BN bias
    # o_ref:     (1, TR, Wo, Cout)
    _, TR, Wp, C6 = x_ref.shape
    Wo = Wp - 1
    Cin = C6 // 6
    Cconv = wg_ref.shape[2]
    Cout = Cconv + Cin
    M = TR * Wo

    # Two spatial views (output-column offset 0 and +1); every conv tap and every pool
    # element is a lane sub-slice of one of these.  Loaded once per tile (nothing per-row).
    s0 = x_ref[0, :, 0:Wo, :].reshape(M, C6)
    s1 = x_ref[0, :, 1:Wp, :].reshape(M, C6)

    # ---- 3x3 stride-2 conv: two MXU matmuls, K = 6*Cin, M = TR*Wo, f32 accumulation ----
    acc = jnp.dot(s0, wg_ref[0], preferred_element_type=jnp.float32)
    acc = acc + jnp.dot(s1, wg_ref[1], preferred_element_type=jnp.float32)
    conv = jnp.maximum(acc * scale_ref[:, 0:Cconv] + bias_ref[:, 0:Cconv], 0.0)

    # ---- 2x2 stride-2 max pool from lane sub-slices of the same two views ----
    pmax = jnp.maximum(
        jnp.maximum(s0[:, 3 * Cin:4 * Cin], s1[:, 2 * Cin:3 * Cin]),
        jnp.maximum(s0[:, 5 * Cin:6 * Cin], s1[:, 4 * Cin:5 * Cin]),
    ).astype(jnp.float32)
    pool = jnp.maximum(pmax * scale_ref[:, Cconv:Cout] + bias_ref[:, Cconv:Cout], 0.0)

    # One conv store + one pool store per tile.
    o_ref[0, :, :, 0:Cconv] = conv.reshape(TR, Wo, Cconv).astype(o_ref.dtype)
    o_ref[0, :, :, Cconv:Cout] = pool.reshape(TR, Wo, Cin).astype(o_ref.dtype)


def _round_up(v, m):
    return (v + m - 1) // m * m


def _pick_tile_rows(ho, per_row_bytes, budget_bytes):
    """Largest divisor of Ho whose double-buffered blocks fit the VMEM budget."""
    max_rows = max(1, int(budget_bytes // max(per_row_bytes, 1)))
    if ho <= max_rows:
        return ho
    best = 1
    for tr in range(1, max_rows + 1):
        if ho % tr == 0:
            best = tr
    return best


def downsampler_block(x_nchw, w_oihw, gamma, beta, running_mean, running_var,
                      eps=1e-3, compute_dtype=None,
                      vmem_block_budget=12 * 1024 * 1024):
    """ERFNet DownsamplerBlock forward (inference). Returns NHWC (N, H//2, W//2, noutput)."""
    N, Cin, H, W = x_nchw.shape
    Cconv = w_oihw.shape[0]                   # = noutput - ninput
    Cout = Cconv + Cin
    assert H % 2 == 0 and W % 2 == 0, "DownsamplerBlock kernel assumes even H, W"
    Ho, Wo = H // 2, W // 2
    Wp = Wo + 1
    C6 = 6 * Cin
    in_dtype = compute_dtype or x_nchw.dtype  # bf16 here halves HBM traffic on v6e/v7x

    # ---- glue (plain JAX): layout prep -------------------------------------------------
    x = jnp.transpose(x_nchw, (0, 2, 3, 1))                      # NCHW -> NHWC
    xpad = jnp.pad(x, ((0, 0), (1, 1), (1, 1), (0, 0)))          # conv padding = 1
    # Phase merge: x6[n, a, b, (dh*2+dw)*Cin + c] = xpad[n, 2a+dh, 2b+dw, c]
    x6 = jnp.concatenate(
        [xpad[:, dh:dh + 2 * Ho:2, dw:dw + 2 * Wp:2, :]
         for dh in range(3) for dw in range(2)],
        axis=-1).astype(in_dtype)                                # (N, Ho, Wp, 6*Cin)

    # Grouped conv weights: wg[ow, (kh*2+dw)*Cin + c, o] = w[o, c, kh, 2*ow+dw] (0 if kw>2)
    w_t = jnp.transpose(w_oihw, (2, 3, 1, 0))                    # (3,3,Cin,Cconv) [kh,kw,c,o]
    w_p = jnp.pad(w_t, ((0, 0), (0, 1), (0, 0), (0, 0)))         # kw -> 4
    wg = (w_p.reshape(3, 2, 2, Cin, Cconv)                       # [kh, ow, dw, c, o]
              .transpose(1, 0, 2, 3, 4)                          # [ow, kh, dw, c, o]
              .reshape(2, C6, Cconv)).astype(in_dtype)

    # Fold inference BN into per-channel scale/bias (conv channels first, pool channels last).
    scale = (gamma / jnp.sqrt(running_var + eps)).astype(jnp.float32)
    bias = beta.astype(jnp.float32) - running_mean.astype(jnp.float32) * scale
    scale = scale.reshape(1, Cout)
    bias = bias.reshape(1, Cout)

    # ---- row-tile size: keep double-buffered blocks within the VMEM budget --------------
    in_row = _round_up(Wp, 8) * _round_up(C6, 128) * jnp.dtype(in_dtype).itemsize
    out_row = _round_up(Wo, 8) * _round_up(Cout, 128) * jnp.dtype(x_nchw.dtype).itemsize
    tr = _pick_tile_rows(Ho, 2 * (in_row + out_row), vmem_block_budget)
    grid = (N, Ho // tr)

    cost = pl.CostEstimate(
        flops=2 * N * Ho * Wo * 9 * Cin * Cconv,
        transcendentals=0,
        bytes_accessed=(x6.size * x6.dtype.itemsize
                        + wg.size * wg.dtype.itemsize
                        + N * Ho * Wo * Cout * jnp.dtype(x_nchw.dtype).itemsize),
    )

    out = pl.pallas_call(
        _downsampler_kernel,
        out_shape=jax.ShapeDtypeStruct((N, Ho, Wo, Cout), x_nchw.dtype),
        grid_spec=pltpu.PrefetchScalarGridSpec(
            num_scalar_prefetch=0,
            grid=grid,
            in_specs=[
                pl.BlockSpec((1, tr, Wp, C6), lambda n, t: (n, t, 0, 0)),
                pl.BlockSpec((2, C6, Cconv), lambda n, t: (0, 0, 0)),
                pl.BlockSpec((1, Cout), lambda n, t: (0, 0)),
                pl.BlockSpec((1, Cout), lambda n, t: (0, 0)),
            ],
            out_specs=pl.BlockSpec((1, tr, Wo, Cout), lambda n, t: (n, t, 0, 0)),
        ),
        compiler_params=pltpu.CompilerParams(
            dimension_semantics=("parallel", "parallel"),
            vmem_limit_bytes=32 * 1024 * 1024,
        ),
        cost_estimate=cost,
    )(x6, wg, scale, bias)
    return out


def reference(x_nchw, w_oihw, gamma, beta, mean, var, eps=1e-3):
    """Pure-JAX reference (NHWC output) for correctness checking."""
    x = jnp.transpose(x_nchw, (0, 2, 3, 1))
    conv = jax.lax.conv_general_dilated(
        x, jnp.transpose(w_oihw, (2, 3, 1, 0)),
        window_strides=(2, 2), padding=((1, 1), (1, 1)),
        dimension_numbers=('NHWC', 'HWIO', 'NHWC'))
    pool = jax.lax.reduce_window(x, -jnp.inf, jax.lax.max,
                                 (1, 2, 2, 1), (1, 2, 2, 1), 'VALID')
    out = jnp.concatenate([conv, pool], axis=-1)
    scale = gamma / jnp.sqrt(var + eps)
    bias = beta - mean * scale
    return jnp.maximum(out * scale + bias, 0.0)


if __name__ == "__main__":
    N, Cin, H, W = 2, 4, 16, 16          # ninput = 4
    Cout = 16                            # noutput = 16 -> conv produces 12 channels
    Cconv = Cout - Cin

    key = jax.random.PRNGKey(0)
    k1, k2, k3, k4, k5, k6 = jax.random.split(key, 6)
    x = jax.random.normal(k1, (N, Cin, H, W), jnp.float32)
    w = 0.2 * jax.random.normal(k2, (Cconv, Cin, 3, 3), jnp.float32)
    gamma = 1.0 + 0.1 * jax.random.normal(k3, (Cout,), jnp.float32)
    beta = 0.1 * jax.random.normal(k4, (Cout,), jnp.float32)
    running_mean = 0.1 * jax.random.normal(k5, (Cout,), jnp.float32)
    running_var = 1.0 + 0.1 * jax.random.uniform(k6, (Cout,), jnp.float32)

    out = downsampler_block(x, w, gamma, beta, running_mean, running_var)
    out = jax.block_until_ready(out)

    ref = reference(x, w, gamma, beta, running_mean, running_var)
    assert out.shape == (N, H // 2, W // 2, Cout), out.shape
    max_err = float(jnp.max(jnp.abs(out - ref)))
    assert jnp.allclose(out, ref, atol=1e-4, rtol=1e-4), max_err
    print("KERNEL_OK")
</pallas_src>

<mosaic_0001>
module attributes {stable_mosaic.version = 11 : i64} {
  func.func @_downsampler_kernel(%arg0: i32, %arg1: i32, %arg2: memref<1x8x9x24xf32, #tpu.memory_space<vmem>>, %arg3: memref<2x24x12xf32, #tpu.memory_space<vmem>>, %arg4: memref<1x16xf32, #tpu.memory_space<vmem>>, %arg5: memref<1x16xf32, #tpu.memory_space<vmem>>, %arg6: memref<1x8x8x16xf32, #tpu.memory_space<vmem>>) attributes {dimension_semantics = [#tpu.dimension_semantics<parallel>, #tpu.dimension_semantics<parallel>], iteration_bounds = array<i64: 2, 1>, scalar_prefetch = 0 : i64, scratch_operands = 0 : i64, tpu.core_type = #tpu.core_type<tc>, window_params = [{transform_indices = @transform_0, window_bounds = array<i64: 1, 8, 9, 24>}, {pipeline_mode = #tpu.pipeline_mode<synchronous>, transform_indices = @transform_1, window_bounds = array<i64: 2, 24, 12>}, {pipeline_mode = #tpu.pipeline_mode<synchronous>, transform_indices = @transform_2, window_bounds = array<i64: 1, 16>}, {pipeline_mode = #tpu.pipeline_mode<synchronous>, transform_indices = @transform_3, window_bounds = array<i64: 1, 16>}, {transform_indices = @transform_4, window_bounds = array<i64: 1, 8, 8, 16>}]} {
    %c0 = arith.constant 0 : index
    %c0_0 = arith.constant 0 : index
    %c0_1 = arith.constant 0 : index
    %c0_2 = arith.constant 0 : index
    %0 = vector.load %arg2[%c0, %c0_0, %c0_1, %c0_2] : memref<1x8x9x24xf32, #tpu.memory_space<vmem>>, vector<1x8x8x24xf32>
    %1 = vector.shape_cast %0 : vector<1x8x8x24xf32> to vector<8x8x24xf32>
    %2 = vector.shape_cast %1 : vector<8x8x24xf32> to vector<64x24xf32>
    %c0_3 = arith.constant 0 : index
    %c0_4 = arith.constant 0 : index
    %c1 = arith.constant 1 : index
    %c0_5 = arith.constant 0 : index
    %3 = vector.load %arg2[%c0_3, %c0_4, %c1, %c0_5] : memref<1x8x9x24xf32, #tpu.memory_space<vmem>>, vector<1x8x8x24xf32>
    %4 = vector.shape_cast %3 : vector<1x8x8x24xf32> to vector<8x8x24xf32>
    %5 = vector.shape_cast %4 : vector<8x8x24xf32> to vector<64x24xf32>
    %c0_6 = arith.constant 0 : index
    %c0_7 = arith.constant 0 : index
    %c0_8 = arith.constant 0 : index
    %6 = vector.load %arg3[%c0_6, %c0_7, %c0_8] : memref<2x24x12xf32, #tpu.memory_space<vmem>>, vector<1x24x12xf32>
    %7 = vector.shape_cast %6 : vector<1x24x12xf32> to vector<24x12xf32>
    %cst = arith.constant dense<0.000000e+00> : vector<64x12xf32>
    %8 = tpu.matmul %2, %7, %cst {dimension_numbers = #tpu.dot_dimension_numbers<[1], [0], [0], [1], [0, 0, 1, 1], [], []>} : vector<64x24xf32>, vector<24x12xf32>, vector<64x12xf32> -> vector<64x12xf32>
    %c1_9 = arith.constant 1 : index
    %c0_10 = arith.constant 0 : index
    %c0_11 = arith.constant 0 : index
    %9 = vector.load %arg3[%c1_9, %c0_10, %c0_11] : memref<2x24x12xf32, #tpu.memory_space<vmem>>, vector<1x24x12xf32>
    %10 = vector.shape_cast %9 : vector<1x24x12xf32> to vector<24x12xf32>
    %cst_12 = arith.constant dense<0.000000e+00> : vector<64x12xf32>
    %11 = tpu.matmul %5, %10, %cst_12 {dimension_numbers = #tpu.dot_dimension_numbers<[1], [0], [0], [1], [0, 0, 1, 1], [], []>} : vector<64x24xf32>, vector<24x12xf32>, vector<64x12xf32> -> vector<64x12xf32>
    %12 = arith.addf %8, %11 : vector<64x12xf32>
    %c0_13 = arith.constant 0 : index
    %c0_14 = arith.constant 0 : index
    %13 = vector.load %arg4[%c0_13, %c0_14] : memref<1x16xf32, #tpu.memory_space<vmem>>, vector<1x12xf32>
    %14 = vector.broadcast %13 : vector<1x12xf32> to vector<64x12xf32>
    %15 = arith.mulf %12, %14 : vector<64x12xf32>
    %c0_15 = arith.constant 0 : index
    %c0_16 = arith.constant 0 : index
    %16 = vector.load %arg5[%c0_15, %c0_16] : memref<1x16xf32, #tpu.memory_space<vmem>>, vector<1x12xf32>
    %17 = vector.broadcast %16 : vector<1x12xf32> to vector<64x12xf32>
    %18 = arith.addf %15, %17 : vector<64x12xf32>
    %cst_17 = arith.constant 0.000000e+00 : f32
    %19 = vector.broadcast %cst_17 : f32 to vector<64x12xf32>
    %20 = arith.maximumf %18, %19 : vector<64x12xf32>
    %21 = vector.extract_strided_slice %2 {offsets = [0, 12], sizes = [64, 4], strides = [1, 1]} : vector<64x24xf32> to vector<64x4xf32>
    %22 = vector.extract_strided_slice %5 {offsets = [0, 8], sizes = [64, 4], strides = [1, 1]} : vector<64x24xf32> to vector<64x4xf32>
    %23 = arith.maximumf %21, %22 : vector<64x4xf32>
    %24 = vector.extract_strided_slice %2 {offsets = [0, 20], sizes = [64, 4], strides = [1, 1]} : vector<64x24xf32> to vector<64x4xf32>
    %25 = vector.extract_strided_slice %5 {offsets = [0, 16], sizes = [64, 4], strides = [1, 1]} : vector<64x24xf32> to vector<64x4xf32>
    %26 = arith.maximumf %24, %25 : vector<64x4xf32>
    %27 = arith.maximumf %23, %26 : vector<64x4xf32>
    %c0_18 = arith.constant 0 : index
    %c12 = arith.constant 12 : index
    %28 = vector.load %arg4[%c0_18, %c12] : memref<1x16xf32, #tpu.memory_space<vmem>>, vector<1x4xf32>
    %29 = vector.broadcast %28 : vector<1x4xf32> to vector<64x4xf32>
    %30 = arith.mulf %27, %29 : vector<64x4xf32>
    %c0_19 = arith.constant 0 : index
    %c12_20 = arith.constant 12 : index
    %31 = vector.load %arg5[%c0_19, %c12_20] : memref<1x16xf32, #tpu.memory_space<vmem>>, vector<1x4xf32>
    %32 = vector.broadcast %31 : vector<1x4xf32> to vector<64x4xf32>
    %33 = arith.addf %30, %32 : vector<64x4xf32>
    %cst_21 = arith.constant 0.000000e+00 : f32
    %34 = vector.broadcast %cst_21 : f32 to vector<64x4xf32>
    %35 = arith.maximumf %33, %34 : vector<64x4xf32>
    %36 = vector.shape_cast %20 : vector<64x12xf32> to vector<8x8x12xf32>
    %c0_22 = arith.constant 0 : index
    %c0_23 = arith.constant 0 : index
    %c0_24 = arith.constant 0 : index
    %c0_25 = arith.constant 0 : index
    %37 = vector.load %arg6[%c0_22, %c0_23, %c0_24, %c0_25] : memref<1x8x8x16xf32, #tpu.memory_space<vmem>>, vector<1x8x8x12xf32>
    %38 = vector.shape_cast %37 : vector<1x8x8x12xf32> to vector<8x8x12xf32>
    %39 = vector.shape_cast %36 : vector<8x8x12xf32> to vector<1x8x8x12xf32>
    tpu.vector_store %arg6[%c0_22, %c0_23, %c0_24, %c0_25], %39 {strides = array<i32>} : memref<1x8x8x16xf32, #tpu.memory_space<vmem>>, vector<1x8x8x12xf32>,
    %40 = vector.shape_cast %35 : vector<64x4xf32> to vector<8x8x4xf32>
    %c0_26 = arith.constant 0 : index
    %c0_27 = arith.constant 0 : index
    %c0_28 = arith.constant 0 : index
    %c12_29 = arith.constant 12 : index
    %41 = vector.load %arg6[%c0_26, %c0_27, %c0_28, %c12_29] : memref<1x8x8x16xf32, #tpu.memory_space<vmem>>, vector<1x8x8x4xf32>
    %42 = vector.shape_cast %41 : vector<1x8x8x4xf32> to vector<8x8x4xf32>
    %43 = vector.shape_cast %40 : vector<8x8x4xf32> to vector<1x8x8x4xf32>
    tpu.vector_store %arg6[%c0_26, %c0_27, %c0_28, %c12_29], %43 {strides = array<i32>} : memref<1x8x8x16xf32, #tpu.memory_space<vmem>>, vector<1x8x8x4xf32>,
    return
  }
  func.func @transform_0(%arg0: i32, %arg1: i32) -> (i32, i32, i32, i32) {
    %c0_i32 = arith.constant 0 : i32
    %c0_i32_0 = arith.constant 0 : i32
    %c0_i32_1 = arith.constant 0 : i32
    return %arg0, %arg1, %c0_i32, %c0_i32_0 : i32, i32, i32, i32
  }
  func.func @transform_1(%arg0: i32, %arg1: i32) -> (i32, i32, i32) {
    %c0_i32 = arith.constant 0 : i32
    %c0_i32_0 = arith.constant 0 : i32
    %c0_i32_1 = arith.constant 0 : i32
    %c0_i32_2 = arith.constant 0 : i32
    return %c0_i32, %c0_i32_0, %c0_i32_1 : i32, i32, i32
  }
  func.func @transform_2(%arg0: i32, %arg1: i32) -> (i32, i32) {
    %c0_i32 = arith.constant 0 : i32
    %c0_i32_0 = arith.constant 0 : i32
    %c0_i32_1 = arith.constant 0 : i32
    return %c0_i32, %c0_i32_0 : i32, i32
  }
  func.func @transform_3(%arg0: i32, %arg1: i32) -> (i32, i32) {
    %c0_i32 = arith.constant 0 : i32
    %c0_i32_0 = arith.constant 0 : i32
    %c0_i32_1 = arith.constant 0 : i32
    return %c0_i32, %c0_i32_0 : i32, i32
  }
  func.func @transform_4(%arg0: i32, %arg1: i32) -> (i32, i32, i32, i32) {
    %c0_i32 = arith.constant 0 : i32
    %c0_i32_0 = arith.constant 0 : i32
    %c0_i32_1 = arith.constant 0 : i32
    return %arg0, %arg1, %c0_i32, %c0_i32_0 : i32, i32, i32, i32
  }
}

</mosaic_0001>

<bundles_post_ra>
// kernel: tpu_custom_call.1
= control target key start
LH: loop header
LB: loop body
LE: loop exit
PB: predicated region body
PF: predicated region fallthrough
CT: control target
= control target key end

     0   :  { %9 = vsyncpa [#allocation3], 0  ;;  %s1310_s0 = inlined_call_operand.vmem [shape: f32[2,8,9,24], index: 0, kind: input, shape index: {}]   ;;  %s1311_s1 = inlined_call_operand.vmem [shape: f32[2,24,12], index: 1, kind: input, shape index: {}]   ;;  %s1312_s2 = inlined_call_operand.vmem [shape: f32[1,16], index: 2, kind: input, shape index: {}]   ;;  %s1313_s3 = inlined_call_operand.vmem [shape: f32[1,16], index: 3, kind: input, shape index: {}]   ;;  %s1314_s4 = inlined_call_operand.hbm [shape: f32[2,8,8,16], index: 4, kind: output, shape index: {}]  }
   0x1   :  { %11 = vsyncpa [#allocation3 + $0x1], 0  ;;  %s1023_s15 = smov 0   ;;  %s1025_s16 = smov 0  }
   0x2   :  { %s1027_s17 = smov 0   ;;  %s1029_s18 = smov 0  }
   0x3   :  { %s1031_s19 = smov 0   ;;  %s1033_s20 = smov 0  }
   0x4 LB: > { %s762_s21 = sadd.s32 4294967295, %s991_s20   ;;  %s763_s22 = sadd.s32 4294967294, %s991_s20   ;;  %s991_s20 = sphi %s1033_s20, %s17_s20   ;;  %s987_s19 = sphi %s1031_s19, %s1321_s19   ;;  %s983_s18 = sphi %s1029_s18, %s1320_s18   ;;  %s979_s17 = sphi %s1027_s17, %s1319_s17   ;;  %s975_s16 = sphi %s1025_s16, %s1318_s16   ;;  %s971_s15 = sphi %s1023_s15, %s1317_s15  }
   0x5   : > { %s29_s23 = sadd.s32 1, %s987_s19  ;;  %s129_s24 = sadd.s32 1, %s979_s17 }
   0x6   : > { %p31_p0 = scmp.ge.s32.totalorder %s29_s23, 2  ;;  %p139_p1 = scmp.ne.s32.totalorder %s979_s17, %s975_s16 }
   0x7   : > { %p140_p2 = scmp.eq.s32.totalorder %s762_s21, 1  ;;  %p145_p3 = scmp.ne.s32.totalorder %s975_s16, %s971_s15 }
   0x8   : > { %s1323_s23 = smov (%p31_p0, %s29_s23), 0  ;;  %p146_p5 = scmp.eq.s32.totalorder %s763_s22, 1 }
   0x9   : > { %p1063_p4 = por %p140_p2, %p139_p1  ;;  %s124_s26 = ssub.s32 %s987_s19, %s1323_s23 }
   0xa   : > { %p766_p6 = scmp.ge.s32.totalorder %s991_s20, 1  ;;  %p127_p7 = scmp.eq.s32.totalorder %s124_s26, 0 }
   0xb   : > { %p1070_p8 = por %p146_p5, %p145_p3  ;;  %p187_p9 = scmp.lt.s32.totalorder %s991_s20, 3 }
   0xc   : > { %s1076_s28 = scalar_select %p127_p7, %s979_s17, %s129_s24  }
   0xd   : > { %p188_p10 = pnand %p766_p6, %p187_p9 }
   0xe   : > { %p219_p11 = scmp.lt.s32.totalorder (!%p188_p10), %s983_s18, 1  ;;  %s993_s30 = smov (!%p188_p10), 4  }
   0xf   : > { %191 = sbr.rel (%p188_p10) target bundleno = 297 (0x129), region = 36  ;;  %s994_s5 = smov (!%p188_p10), 120  }
  0x10   : > { %s215_s6 = sand.u32 (!%p188_p10), 1, %s975_s16   ;;  %s797_s13 = sshll.u32 (!%p188_p10), %s983_s18, 10 }
  0x11   : > { %s1257_s24 = scalar_lea.hbm (!%p188_p10), %s1314_s4, %s797_s13 }
  0x14   : > { %v772_v0 = vld [vmem:[%s1311_s1 + $0x28] sm:$0xff]  ;;  %v248_v1 = vld [vmem:[%s1311_s1 + $0x10] sm:$0xff]  ;;  %v771_v2 = vld [vmem:[%s1311_s1 + $0x20] sm:$0xff]  ;;  %s220_s11 = scalar_select %p219_p11, %s983_s18, 1  ;;  %vm253_vm0 = vcmask 195584   ;;  %vm646_vm1 = vcmask 97280  }
  0x15   : > { %820 = vmatprep.subr.mxu0 %v772_v0  ;;  %838 = vmatprep.subr.mxu1 %v248_v1  ;;  %v247_v3 = vld [vmem:[%s1311_s1 + $0x8] sm:$0xff]  ;;  %v770_v4 = vld [vmem:[%s1311_s1 + $0x18] sm:$0xff]  ;;  %v246_v5 = vld [vmem:[%s1311_s1] sm:$0xff]  ;;  %vm655_vm2 = vcmask 130144   ;;  %s1265_s18 = scalar_lea.sflag [#allocation3], %s215_s6 }
  0x16   : > { %821 = vmatpush3.msra.mxu0 %v772_v0  ;;  %839 = vmatpush3.msra.mxu1 %v248_v1  ;;  %s796_s22 = sshll.u32 %s220_s11, 7  ;;  %v1171_v43 = vld [vmem:[%s1312_s2] ss:$0 sm:$0xff]  ;;  %s767_s11 = sshll.u32 %s215_s6, 6 }
  0x17   : > { %822 = vmatprep.subr.mxu0 %v771_v2  ;;  %840 = vmatprep.subr.mxu1 %v247_v3  ;;  %s1101_s29 = scalar_lea.vmem %s1310_s0, %s796_s22  ;;  %v1177_v48 = vld [vmem:[%s1313_s3] ss:$0 sm:$0xff]  ;;  %s1185_s12 = scalar_lea.vmem [#allocation2], %s767_s11 }
  0x18   : > { %823 = vmatpush3.msra.mxu0 %v771_v2  ;;  %841 = vmatpush3.msra.mxu1 %v247_v3  ;;  %v238_v6 = vld [vmem:[%s1101_s29 + $0x1] sm:$0xff]  ;;  %v239_v8 = vld [vmem:[%s1101_s29 + $0x11] sm:$0xff]  ;;  %s680_s14 = sshll.u32 %s1185_s12, 4  ;;  %s1259_s14 = int_to_ptr.vmem [resolvable:$true] %s680_s14 }
  0x19   : > { %824 = vmatprep.subr.mxu0 %v770_v4  ;;  %842 = vmatprep.subr.mxu1 %v246_v5  ;;  %v240_v7 = vld [vmem:[%s1101_s29 + $0x21] sm:$0xff]  ;;  %v241_v9 = vld [vmem:[%s1101_s29 + $0x31] sm:$0xff]  ;;  %s915_s26 = scalar_lea.vmem %s1259_s14, 1024 }
  0x1a   : > { %825 = vmatpush3.msra.mxu0 %v770_v4  ;;  %843 = vmatpush3.msra.mxu1 %v246_v5  ;;  %v230_v10 = vld [vmem:[%s1101_s29] sm:$0xff]  ;;  %v231_v11 = vld [vmem:[%s1101_s29 + $0x10] sm:$0xff]  ;;  %p916_p12 = scmp.ne.s32.totalorder %s1259_s14, %s915_s26 }
  0x1b   : > { %550 = vrot.lane.b32.xlu0 %v238_v6, %s993_s30  ;;  %554 = vrot.lane.b32.xlu1 %v240_v7, %s993_s30  ;;  %v232_v12 = vld [vmem:[%s1101_s29 + $0x20] sm:$0xff]  ;;  %v243_v14 = vld [vmem:[%s1101_s29 + $0x51] sm:$0xff] }
  0x1c   : > { %826 = vmatprep.mubr.msk.f32.mxu0 %vm253_vm0, %v238_v6  ;;  %844 = vmatprep.mubr.msk.f32.mxu1 %vm253_vm0, %v230_v10  ;;  %v242_v13 = vld [vmem:[%s1101_s29 + $0x41] sm:$0xff]  ;;  %v233_v15 = vld [vmem:[%s1101_s29 + $0x30] sm:$0xff]  ;;  %p917_p13 = pnand %p916_p12, %p1063_p4 }
  0x1d   : > { %827 = vmatmul.mubr.msk.f32.vlgmr.msra.gmra.mxu0 %vm253_vm0, %v239_v8  ;;  %845 = vmatmul.mubr.msk.f32.vlgmr.msra.gmra.mxu1 %vm253_vm0, %v231_v11  ;;  %v234_v16 = vld [vmem:[%s1101_s29 + $0x40] sm:$0xff]  ;;  %v245_v18 = vld [vmem:[%s1101_s29 + $0x71] sm:$0xff] }
  0x1e   : > { %829 = vmatprep.mubr.msk.f32.mxu0 %vm253_vm0, %v240_v7  ;;  %847 = vmatprep.mubr.msk.f32.mxu1 %vm253_vm0, %v232_v12  ;;  %v244_v17 = vld [vmem:[%s1101_s29 + $0x61] sm:$0xff]  ;;  %v235_v19 = vld [vmem:[%s1101_s29 + $0x50] sm:$0xff]  ;;  %p918_p0 = pneg %p917_p13 }
  0x1f   : > { %552 = vrot.lane.b32.xlu0 %v239_v8, %s993_s30  ;;  %556 = vrot.lane.b32.xlu1 %v241_v9, %s993_s30  ;;  %v236_v20 = vld [vmem:[%s1101_s29 + $0x60] sm:$0xff]  ;;  %v237_v21 = vld [vmem:[%s1101_s29 + $0x70] sm:$0xff]  ;;  %s995_s29 = smov [#allocation2]  }
  0x21   : > { %830 = vmatmul.mubr.msk.f32.gmra.mxu0 %vm253_vm0, %v241_v9  ;;  %848 = vmatmul.mubr.msk.f32.gmra.mxu1 %vm253_vm0, %v233_v15 }
  0x22   : > { %832 = vmatprep.mubr.msk.f32.mxu0 %vm253_vm0, %v242_v13  ;;  %850 = vmatprep.mubr.msk.f32.mxu1 %vm253_vm0, %v234_v16 }
  0x23   : > { %558 = vrot.lane.b32.xlu0 %v242_v13, %s993_s30  ;;  %560 = vrot.lane.b32.xlu1 %v243_v14, %s993_s30 }
  0x25   : > { %833 = vmatmul.mubr.msk.f32.gmra.mxu0 %vm253_vm0, %v243_v14  ;;  %851 = vmatmul.mubr.msk.f32.gmra.mxu1 %vm253_vm0, %v235_v19 }
  0x26   : > { %835 = vmatprep.mubr.msk.f32.mxu0 %vm253_vm0, %v244_v17  ;;  %853 = vmatprep.mubr.msk.f32.mxu1 %vm253_vm0, %v236_v20 }
  0x27   : > { %562 = vrot.lane.b32.xlu0 %v244_v17, %s993_s30  ;;  %564 = vrot.lane.b32.xlu1 %v245_v18, %s993_s30  ;;  %s919_s30 = sshll.u32 %s995_s29, 4  ;;  %s920_s30 = int_to_ptr.vmem [resolvable:$false] %s919_s30 }
  0x28   : > { %p922_p1 = scmp.lt.s32.totalorder %s1259_s14, %s920_s30 }
  0x29   : > { %836 = vmatmul.mubr.msk.f32.gmra.mxu0 %vm253_vm0, %v245_v18  ;;  %854 = vmatmul.mubr.msk.f32.gmra.mxu1 %vm253_vm0, %v237_v21 }
  0x8d   : > { %v551_v22 = vpop.permute.xlu0 %550  ;;  %v555_v23 = vpop.permute.xlu1 %554 }
  0x8e   : > { %v1143_v24 = vmax.f32 %v230_v10, %v551_v22  ;;  %v1146_v25 = vmax.f32 %v232_v12, %v555_v23 }
  0x90   : > { %590 = vrot.lane.b32.xlu0 %v1143_v24, %s994_s5 }
  0x91   : > { %v553_v26 = vpop.permute.xlu0 %552  ;;  %v557_v27 = vpop.permute.xlu1 %556 }
  0x92   : > { %v1148_v28 = vmax.f32 %v231_v11, %v553_v26  ;;  %v1152_v29 = vmax.f32 %v233_v15, %v557_v27 }
  0x94   : > { %592 = vrot.lane.b32.xlu1 %v1148_v28, %s994_s5  ;;  %594 = vrot.lane.b32.xlu0 %v1146_v25, %s994_s5 }
  0x95   : > { %v559_v30 = vpop.permute.xlu0 %558  ;;  %v561_v31 = vpop.permute.xlu1 %560 }
  0x96   : > { %v1154_v32 = vmax.f32 %v234_v16, %v559_v30  ;;  %v1158_v33 = vmax.f32 %v235_v19, %v561_v31 }
  0x98   : > { %596 = vrot.lane.b32.xlu1 %v1152_v29, %s994_s5  ;;  %598 = vrot.lane.b32.xlu0 %v1154_v32, %s994_s5 }
  0x99   : > { %v563_v34 = vpop.permute.xlu0 %562  ;;  %v565_v35 = vpop.permute.xlu1 %564 }
  0x9a   : > { %v1160_v36 = vmax.f32 %v236_v20, %v563_v34  ;;  %v1164_v37 = vmax.f32 %v237_v21, %v565_v35 }
  0x9c   : > { %600 = vrot.lane.b32.xlu1 %v1158_v33, %s994_s5  ;;  %602 = vrot.lane.b32.xlu0 %v1160_v36, %s994_s5 }
  0xa0   : > { %604 = vrot.lane.b32.xlu1 %v1164_v37, %s994_s5  ;;  %s921_s5 = scalar_lea.vmem %s920_s30, 2048 }
  0xa1   : > { %p923_p2 = scmp.lt.s32.totalorder %s921_s5, %s915_s26 }
  0xa3   : > { %p924_p3 = por %p923_p2, %p922_p1 }
  0xa5   : > { %p925_p5 = pnand %p924_p3, %p918_p0 }
  0xdd   : > { %v828_v38 = vpop.f32.mrf.mxu0  ;;  %v846_v40 = vpop.f32.mrf.mxu1 }
  0xde   : > { %v479_v41 = vadd.f32 %v846_v40, %v828_v38 }
  0xdf   : > { %v344_v39 = vpop.f32.mrf.mxu0  ;;  %v473_v44 = vpop.f32.mrf.mxu1 }
  0xe0   : > { %v520_v45 = vmul.f32 %v1171_v43, %v479_v41  ;;  %v474_v46 = vadd.f32 %v473_v44, %v344_v39 }
  0xe1   : > { %v831_v42 = vpop.f32.mrf.mxu0  ;;  %v849_v49 = vpop.f32.mrf.mxu1 }
  0xe2   : > { %v535_v50 = vadd.f32 %v1177_v48, %v520_v45  ;;  %v519_v51 = vmul.f32 %v1171_v43, %v474_v46  ;;  %v489_v52 = vadd.f32 %v849_v49, %v831_v42 }
  0xe3   : > { %v354_v47 = vpop.f32.mrf.mxu0  ;;  %v483_v54 = vpop.f32.mrf.mxu1 }
  0xe4   : > { %v543_v55 = vmax.f32 %v535_v50, 0.0  ;;  %v534_v56 = vadd.f32 %v1177_v48, %v519_v51  ;;  %v522_v57 = vmul.f32 %v1171_v43, %v489_v52  ;;  %v484_v58 = vadd.f32 %v483_v54, %v354_v47 }
  0xe5   : > { %v834_v53 = vpop.f32.mrf.mxu0  ;;  %v852_v60 = vpop.f32.mrf.mxu1 }
  0xe6   : > { %648 = vst.msk [vmem:[%s1185_s12 + $0x8] sm:$0xff] %vm646_vm1, %v543_v55  ;;  %v542_v61 = vmax.f32 %v534_v56, 0.0  ;;  %v537_v62 = vadd.f32 %v1177_v48, %v522_v57  ;;  %v521_v63 = vmul.f32 %v1171_v43, %v484_v58  ;;  %v499_v0 = vadd.f32 %v852_v60, %v834_v53 }
  0xe7   : > { %v364_v59 = vpop.f32.mrf.mxu0  ;;  %v493_v2 = vpop.f32.mrf.mxu1 }
  0xe8   : > { %647 = vst.msk [vmem:[%s1185_s12] sm:$0xff] %vm646_vm1, %v542_v61  ;;  %v545_v3 = vmax.f32 %v537_v62, 0.0  ;;  %v536_v4 = vadd.f32 %v1177_v48, %v521_v63  ;;  %v524_v5 = vmul.f32 %v1171_v43, %v499_v0  ;;  %v494_v6 = vadd.f32 %v493_v2, %v364_v59 }
  0xe9   : > { %v837_v1 = vpop.f32.mrf.mxu0  ;;  %v855_v7 = vpop.f32.mrf.mxu1 }
  0xea   : > { %650 = vst.msk [vmem:[%s1185_s12 + $0x18] sm:$0xff] %vm646_vm1, %v545_v3  ;;  %v544_v9 = vmax.f32 %v536_v4, 0.0  ;;  %v539_v10 = vadd.f32 %v1177_v48, %v524_v5  ;;  %v523_v11 = vmul.f32 %v1171_v43, %v494_v6  ;;  %v509_v12 = vadd.f32 %v855_v7, %v837_v1 }
  0xeb   : > { %v374_v8 = vpop.f32.mrf.mxu0  ;;  %v503_v13 = vpop.f32.mrf.mxu1 }
  0xec   : > { %649 = vst.msk [vmem:[%s1185_s12 + $0x10] sm:$0xff] %vm646_vm1, %v544_v9  ;;  %v547_v14 = vmax.f32 %v539_v10, 0.0  ;;  %v538_v15 = vadd.f32 %v1177_v48, %v523_v11  ;;  %v526_v16 = vmul.f32 %v1171_v43, %v509_v12  ;;  %v504_v17 = vadd.f32 %v503_v13, %v374_v8 }
  0xee   : > { %652 = vst.msk [vmem:[%s1185_s12 + $0x28] sm:$0xff] %vm646_vm1, %v547_v14  ;;  %v546_v18 = vmax.f32 %v538_v15, 0.0  ;;  %v541_v19 = vadd.f32 %v1177_v48, %v526_v16  ;;  %v525_v20 = vmul.f32 %v1171_v43, %v504_v17 }
  0xf0   : > { %651 = vst.msk [vmem:[%s1185_s12 + $0x20] sm:$0xff] %vm646_vm1, %v546_v18  ;;  %v549_v21 = vmax.f32 %v541_v19, 0.0  ;;  %v540_v22 = vadd.f32 %v1177_v48, %v525_v20 }
  0xf2   : > { %654 = vst.msk [vmem:[%s1185_s12 + $0x38] sm:$0xff] %vm646_vm1, %v549_v21  ;;  %v548_v23 = vmax.f32 %v540_v22, 0.0 }
  0xf4   : > { %653 = vst.msk [vmem:[%s1185_s12 + $0x30] sm:$0xff] %vm646_vm1, %v548_v23 }
 0x102   : > { %v591_v26 = vpop.permute.xlu0 %590 }
 0x103   : > { %v614_v27 = vmax.f32 %v1143_v24, %v591_v26 }
 0x105   : > { %v622_v30 = vmul.f32 %v1171_v43, %v614_v27 }
 0x106   : > { %v593_v31 = vpop.permute.xlu1 %592  ;;  %v595_v34 = vpop.permute.xlu0 %594 }
 0x107   : > { %v630_v35 = vadd.f32 %v1177_v48, %v622_v30  ;;  %v615_v38 = vmax.f32 %v1148_v28, %v593_v31  ;;  %v616_v39 = vmax.f32 %v1146_v25, %v595_v34 }
 0x109   : > { %v638_v40 = vmax.f32 %v630_v35, 0.0  ;;  %v623_v41 = vmul.f32 %v1171_v43, %v615_v38  ;;  %v624_v42 = vmul.f32 %v1171_v43, %v616_v39 }
 0x10a   : > { %v597_v44 = vpop.permute.xlu1 %596  ;;  %v599_v24 = vpop.permute.xlu0 %598 }
 0x10b   : > { %656 = vst.msk [vmem:[%s1185_s12] sm:$0xff] %vm655_vm2, %v638_v40  ;;  %v631_v45 = vadd.f32 %v1177_v48, %v623_v41  ;;  %v632_v46 = vadd.f32 %v1177_v48, %v624_v42  ;;  %v617_v28 = vmax.f32 %v1152_v29, %v597_v44  ;;  %v618_v25 = vmax.f32 %v1154_v32, %v599_v24 }
 0x10d   : > { %v639_v47 = vmax.f32 %v631_v45, 0.0  ;;  %v640_v49 = vmax.f32 %v632_v46, 0.0  ;;  %v625_v50 = vmul.f32 %v1171_v43, %v617_v28  ;;  %v626_v51 = vmul.f32 %v1171_v43, %v618_v25 }
 0x10e   : > { %v601_v52 = vpop.permute.xlu1 %600  ;;  %v603_v53 = vpop.permute.xlu0 %602 }
 0x10f   : > { %657 = vst.msk [vmem:[%s1185_s12 + $0x8] sm:$0xff] %vm655_vm2, %v639_v47  ;;  %658 = vst.msk [vmem:[%s1185_s12 + $0x10] sm:$0xff] %vm655_vm2, %v640_v49  ;;  %v633_v54 = vadd.f32 %v1177_v48, %v625_v50  ;;  %v634_v29 = vadd.f32 %v1177_v48, %v626_v51  ;;  %v619_v32 = vmax.f32 %v1158_v33, %v601_v52 }
 0x110   : > { %v620_v55 = vmax.f32 %v1160_v36, %v603_v53 }
 0x111   : > { %v641_v56 = vmax.f32 %v633_v54, 0.0  ;;  %v642_v57 = vmax.f32 %v634_v29, 0.0  ;;  %v627_v58 = vmul.f32 %v1171_v43, %v619_v32 }
 0x112   : > { %v628_v59 = vmul.f32 %v1171_v43, %v620_v55  ;;  %v605_v60 = vpop.permute.xlu1 %604 }
 0x113   : > { %659 = vst.msk [vmem:[%s1185_s12 + $0x18] sm:$0xff] %vm655_vm2, %v641_v56  ;;  %660 = vst.msk [vmem:[%s1185_s12 + $0x20] sm:$0xff] %vm655_vm2, %v642_v57  ;;  %v635_v33 = vadd.f32 %v1177_v48, %v627_v58  ;;  %v621_v36 = vmax.f32 %v1164_v37, %v605_v60 }
 0x114   : > { %v636_v61 = vadd.f32 %v1177_v48, %v628_v59 }
 0x115   : > { %v643_v62 = vmax.f32 %v635_v33, 0.0  ;;  %v629_v0 = vmul.f32 %v1171_v43, %v621_v36 }
 0x116   : > { %v644_v63 = vmax.f32 %v636_v61, 0.0 }
 0x117   : > { %661 = vst.msk [vmem:[%s1185_s12 + $0x28] sm:$0xff] %vm655_vm2, %v643_v62  ;;  %v637_v1 = vadd.f32 %v1177_v48, %v629_v0 }
 0x118   : > { %662 = vst.msk [vmem:[%s1185_s12 + $0x30] sm:$0xff] %vm655_vm2, %v644_v63 }
 0x119   : > { %v645_v37 = vmax.f32 %v637_v1, 0.0 }
 0x11b   : > { %663 = vst.msk [vmem:[%s1185_s12 + $0x38] sm:$0xff] %vm655_vm2, %v645_v37 }
 0x11c   : > { %928 = shalt.err (!%p925_p5)
}
 0x11d   : > { %s929_s6 = scalar_lea.hbm %s1257_s24, 1024  ;;  %s933_s9 = scalar_lea.hbm %s1314_s4, 2048 }
 0x11e   : > { %p930_p6 = scmp.ne.s32.totalorder %s1257_s24, %s929_s6  ;;  %p934_p10 = scmp.lt.s32.totalorder %s1257_s24, %s1314_s4 }
 0x11f   : > { %p935_p11 = scmp.lt.s32.totalorder %s933_s9, %s929_s6 }
 0x120   : > { %p931_p7 = pnand %p930_p6, %p1063_p4 }
 0x121   : > { %p936_p12 = por %p935_p11, %p934_p10 }
 0x122   : > { %p932_p9 = pneg %p931_p7 }
 0x124   : > { %p937_p13 = pnand %p936_p12, %p932_p9 }
 0x126   : > { %940 = shalt.err (!%p937_p13)
}
 0x127   : > { %s996_s12 = smov 128   ;;  %s997_s13 = smov 8  }
 0x128   : > { %856 = dma.vmem_to_hbm [thread:$0]  (%p1063_p4), %s1259_s14, 1024, %s1257_s24, %s1265_s18, %s996_s12, %s996_s12, %s997_s13  }
 0x129 PF: > { %p862_p0 = scmp.ge.s32.totalorder %s991_s20, 2  ;;  %s695_s21 = sand.u32 1, %s971_s15  }
 0x12a   : > { %s696_s22 = scalar_lea.sflag [#allocation3], %s695_s21 }
 0x12b   : > { %p859_p1 = pnand %p862_p0, %p1070_p8 }
 0x12d   : > { %p860_p2 = pneg %p859_p1 }
 0x12f   : > { %966 = dma.done.wait (%p860_p2), %s696_s22, 1024  }
 0x130   : > { %968 = vsyncadd (%p860_p2), %s696_s22, 4294966272  ;;  %s17_s20 = sadd.s32 1, %s991_s20   ;;  %s1317_s15 = smov %s975_s16 }
 0x131   : > { %p14_p3 = scmp.ge.s32.totalorder %s17_s20, 4   ;;  %s1318_s16 = smov %s979_s17 }
 0x132   : > { %s1319_s17 = smov %s1076_s28  ;;  %s1320_s18 = smov %s987_s19 }
 0x133   : > { %s1321_s19 = smov %s1323_s23  ;;  %16 = sbr.rel (!%p14_p3) target bundleno = 4 (0x4), region = 72 }
 0x138   :  { %701 = vsyncpa [#allocation3], 1 }
 0x139   :  { %703 = vsyncpa [#allocation3 + $0x1], 1 }

</bundles_post_ra>
